<compile_context>
chip_gen: v5e
topology: v5e:2x2
jax: 0.10.0
libtpu: 0.0.40
codegen_flags: <defaults>
</compile_context>

<pallas_src>
import functools
import math

import jax
import jax.numpy as jnp
from jax import lax
from jax.experimental import pallas as pl
from jax.experimental.pallas import tpu as pltpu


def _round_up(x, m):
    return ((x + m - 1) // m) * m


def _padded_bytes(rows, cols, itemsize):
    """VMEM footprint of a (rows, cols) tile after (8,128) tile padding."""
    return _round_up(rows, 8) * _round_up(cols, 128) * itemsize


def _upsample_block_kernel(x_ref, o_ref, t_ref, *, bchan, h, w, s1, s2, nc,
                           last_partial):
    """One grid step upsamples `bchan` channels.

    x_ref : (bchan*h, W)     input rows for this block's channels
    o_ref : (bchan*s1, S2)   output rows for this block's channels
    t_ref : (bchan*h, S2)    scratch holding the column-replicated block
    """
    cdt = x_ref.dtype

    # One-hot replication matrices, built in-kernel (no DMA, no int division):
    #   r1[i, j] = 1  iff  j == floor(i*H / S1)   (row replication,  S1 x H)
    #   r2[p, q] = 1  iff  p == floor(q*W / S2)   (col replication,  W  x S2)
    ih = jax.lax.broadcasted_iota(jnp.int32, (s1, h), 0) * h        # i*H
    js = jax.lax.broadcasted_iota(jnp.int32, (s1, h), 1) * s1       # j*S1
    r1 = jnp.logical_and(js <= ih, ih < js + s1).astype(cdt)        # (s1, h)

    ps = jax.lax.broadcasted_iota(jnp.int32, (w, s2), 0) * s2       # p*S2
    qw = jax.lax.broadcasted_iota(jnp.int32, (w, s2), 1) * w        # q*W
    r2 = jnp.logical_and(ps <= qw, qw < ps + s2).astype(cdt)        # (w, s2)

    # Hoisted column replication: one large-M matmul over the whole channel
    # block instead of `bchan` tiny M=h matmuls.
    t_ref[...] = jnp.dot(x_ref[...], r2, preferred_element_type=cdt)

    def upsample_one(b):
        rs = pl.multiple_of(b * h, h)
        qs = pl.multiple_of(b * s1, s1)
        tb = t_ref[pl.ds(rs, h), :]                                  # (h, s2)
        ob = jnp.dot(r1, tb, preferred_element_type=cdt)             # (s1, s2)
        o_ref[pl.ds(qs, s1), :] = ob.astype(o_ref.dtype)

    if last_partial:
        i = pl.program_id(0)
        valid = jnp.minimum(bchan, nc - i * bchan)

        def step(b, carry):
            pl.when(b < valid)(lambda: upsample_one(b))
            return carry
    else:
        def step(b, carry):
            upsample_one(b)
            return carry

    lax.fori_loop(0, bchan, step, None, unroll=min(bchan, 4))


def semifinest_up(x, S1, S2):
    """Nearest-neighbor upsampling of NCHW `x` to spatial size (S1, S2)."""
    N, C, H, W = x.shape
    orig_dtype = x.dtype
    if orig_dtype == jnp.float32 or orig_dtype == jnp.bfloat16:
        compute_dtype = orig_dtype
    else:
        # TODO(synk): non-float dtypes routed through f32 (exact for |x| < 2^24).
        compute_dtype = jnp.float32
    xc = x.astype(compute_dtype)

    NC = N * C
    in_item = jnp.dtype(compute_dtype).itemsize
    out_item = jnp.dtype(orig_dtype).itemsize

    # Per-channel VMEM footprint: double-buffered in + out blocks, plus the
    # single-buffered column-replicated scratch t.
    per_chan = (2 * _padded_bytes(H, W, in_item)
                + 2 * _padded_bytes(S1, S2, out_item)
                + _padded_bytes(H, S2, in_item))

    # Generation-aware VMEM budget (v7x: 64 MiB/TC, v5e/v6e: 128 MiB).
    try:
        vmem_cap = int(pltpu.get_tpu_info().vmem_capacity_bytes)
    except Exception:
        vmem_cap = 64 * 1024 * 1024
    budget = 22 * 1024 * 1024 if vmem_cap <= 64 * 1024 * 1024 else 56 * 1024 * 1024

    # (8,128) rule: second-to-last block dims (B*H and B*S1) must be multiples
    # of 8 unless the block spans the whole array (B == NC).
    unit = math.lcm(8 // math.gcd(8, H), 8 // math.gcd(8, S1))

    cap = max(unit, (budget // per_chan // unit) * unit)  # VMEM-limited channels/step

    MIN_STEPS = 4  # keep the pipeline busy even if the whole tensor fits in VMEM
    if NC <= unit:
        B = NC
    else:
        b_pipe = -(-NC // MIN_STEPS)                      # ceil(NC / MIN_STEPS)
        B = min(cap, b_pipe)
        B = max(unit, (B // unit) * unit)
        B = min(B, NC)
        # Prefer an even step count (v7x: 2 TCs share the "parallel" grid axis).
        if B < NC and pl.cdiv(NC, B) % 2 == 1:
            for cand in range(B - unit, max(unit, B - 8 * unit) - 1, -unit):
                if cand >= unit and pl.cdiv(NC, cand) % 2 == 0:
                    B = cand
                    break
    nblocks = pl.cdiv(NC, B)
    last_partial = (NC % B) != 0

    # vmem limit from the real footprint (+ headroom for Mosaic internal scratch).
    footprint = B * per_chan + (4 << 20)
    vmem_limit = int(min(max(footprint, 16 << 20), max(vmem_cap - (4 << 20), 16 << 20)))

    # Collapse (N, C, H, W) -> (N*C*H, W): everything is 2-D and lane-contiguous.
    xr = xc.reshape(NC * H, W)

    kernel = functools.partial(
        _upsample_block_kernel,
        bchan=B, h=H, w=W, s1=S1, s2=S2, nc=NC, last_partial=last_partial)

    out = pl.pallas_call(
        kernel,
        out_shape=jax.ShapeDtypeStruct((NC * S1, S2), orig_dtype),
        grid=(nblocks,),
        in_specs=[pl.BlockSpec((B * H, W), lambda i: (i, 0))],
        out_specs=pl.BlockSpec((B * S1, S2), lambda i: (i, 0)),
        scratch_shapes=[pltpu.VMEM((B * H, S2), compute_dtype)],
        compiler_params=pltpu.CompilerParams(
            dimension_semantics=("parallel",),
            vmem_limit_bytes=vmem_limit,
        ),
    )(xr)

    return out.reshape(N, C, S1, S2)


if __name__ == "__main__":
    # Small shapes consistent with the module (default S1=S2=192 scaled down).
    N, C, H, W = 2, 4, 16, 16
    S1, S2 = 32, 32

    key = jax.random.PRNGKey(0)
    x = jax.random.normal(key, (N, C, H, W), dtype=jnp.float32)

    y = jax.block_until_ready(semifinest_up(x, S1, S2))

    # Reference: pure-JAX nearest-neighbor upsampling (PyTorch 'nearest' indexing).
    ri = (jnp.arange(S1) * H) // S1
    ci = (jnp.arange(S2) * W) // S2
    y_ref = x[:, :, ri, :][:, :, :, ci]

    assert y.shape == (N, C, S1, S2)
    assert y.dtype == x.dtype
    assert jnp.allclose(y, y_ref, atol=1e-6, rtol=1e-6)

    # Second check: non-integer scale factors, single-channel blocks.
    x2 = jax.random.normal(jax.random.PRNGKey(0), (2, 3, 16, 12), dtype=jnp.float32)
    y2 = jax.block_until_ready(semifinest_up(x2, 40, 28))
    ri2 = (jnp.arange(40) * 16) // 40
    ci2 = (jnp.arange(28) * 12) // 28
    y2_ref = x2[:, :, ri2, :][:, :, :, ci2]
    assert jnp.allclose(y2, y2_ref, atol=1e-6, rtol=1e-6)

    print("KERNEL_OK")
</pallas_src>

<mosaic_0001>
module attributes {stable_mosaic.version = 11 : i64} {
  func.func @_upsample_block_kernel(%arg0: i32, %arg1: memref<32x16xf32, #tpu.memory_space<vmem>>, %arg2: memref<64x32xf32, #tpu.memory_space<vmem>>, %arg3: memref<32x32xf32, #tpu.memory_space<vmem>>) attributes {dimension_semantics = [#tpu.dimension_semantics<parallel>], iteration_bounds = array<i64: 4>, scalar_prefetch = 0 : i64, scratch_operands = 1 : i64, tpu.core_type = #tpu.core_type<tc>, window_params = [{transform_indices = @transform_0, window_bounds = array<i64: 32, 16>}, {transform_indices = @transform_1, window_bounds = array<i64: 64, 32>}]} {
    %0 = tpu.iota {dimensions = array<i32: 0>} : vector<32x16xi32>
    %c16_i32 = arith.constant 16 : i32
    %1 = vector.broadcast %c16_i32 : i32 to vector<32x16xi32>
    %2 = arith.muli %0, %1 : vector<32x16xi32>
    %3 = tpu.iota {dimensions = array<i32: 1>} : vector<32x16xi32>
    %c32_i32 = arith.constant 32 : i32
    %4 = vector.broadcast %c32_i32 : i32 to vector<32x16xi32>
    %5 = arith.muli %3, %4 : vector<32x16xi32>
    %6 = arith.cmpi sle, %5, %2 : vector<32x16xi32>
    %c32_i32_0 = arith.constant 32 : i32
    %7 = vector.broadcast %c32_i32_0 : i32 to vector<32x16xi32>
    %8 = arith.addi %5, %7 : vector<32x16xi32>
    %9 = arith.cmpi slt, %2, %8 : vector<32x16xi32>
    %10 = arith.andi %6, %9 : vector<32x16xi1>
    %11 = arith.extui %10 : vector<32x16xi1> to vector<32x16xi32>
    %12 = arith.sitofp %11 : vector<32x16xi32> to vector<32x16xf32>
    %13 = tpu.iota {dimensions = array<i32: 0>} : vector<16x32xi32>
    %c32_i32_1 = arith.constant 32 : i32
    %14 = vector.broadcast %c32_i32_1 : i32 to vector<16x32xi32>
    %15 = arith.muli %13, %14 : vector<16x32xi32>
    %16 = tpu.iota {dimensions = array<i32: 1>} : vector<16x32xi32>
    %c16_i32_2 = arith.constant 16 : i32
    %17 = vector.broadcast %c16_i32_2 : i32 to vector<16x32xi32>
    %18 = arith.muli %16, %17 : vector<16x32xi32>
    %19 = arith.cmpi sle, %15, %18 : vector<16x32xi32>
    %c32_i32_3 = arith.constant 32 : i32
    %20 = vector.broadcast %c32_i32_3 : i32 to vector<16x32xi32>
    %21 = arith.addi %15, %20 : vector<16x32xi32>
    %22 = arith.cmpi slt, %18, %21 : vector<16x32xi32>
    %23 = arith.andi %19, %22 : vector<16x32xi1>
    %24 = arith.extui %23 : vector<16x32xi1> to vector<16x32xi32>
    %25 = arith.sitofp %24 : vector<16x32xi32> to vector<16x32xf32>
    %c0 = arith.constant 0 : index
    %c0_4 = arith.constant 0 : index
    %26 = vector.load %arg1[%c0, %c0_4] : memref<32x16xf32, #tpu.memory_space<vmem>>, vector<32x16xf32>
    %cst = arith.constant dense<0.000000e+00> : vector<32x32xf32>
    %27 = tpu.matmul %26, %25, %cst {dimension_numbers = #tpu.dot_dimension_numbers<[1], [0], [0], [1], [0, 0, 1, 1], [], []>} : vector<32x16xf32>, vector<16x32xf32>, vector<32x32xf32> -> vector<32x32xf32>
    %c0_5 = arith.constant 0 : index
    %c0_6 = arith.constant 0 : index
    %28 = vector.load %arg3[%c0_5, %c0_6] : memref<32x32xf32, #tpu.memory_space<vmem>>, vector<32x32xf32>
    tpu.vector_store %arg3[%c0_5, %c0_6], %27 {strides = array<i32>} : memref<32x32xf32, #tpu.memory_space<vmem>>, vector<32x32xf32>,
    %c0_i32 = arith.constant 0 : i32
    %c16_i32_7 = arith.constant 16 : i32
    %29 = arith.muli %c0_i32, %c16_i32_7 : i32
    %30 = tpu.assume_multiple %29, 16 : i32
    %c32_i32_8 = arith.constant 32 : i32
    %31 = arith.muli %c0_i32, %c32_i32_8 : i32
    %32 = tpu.assume_multiple %31, 32 : i32
    %33 = arith.index_cast %30 : i32 to index
    %c0_9 = arith.constant 0 : index
    %34 = vector.load %arg3[%33, %c0_9] : memref<32x32xf32, #tpu.memory_space<vmem>>, vector<16x32xf32>
    %cst_10 = arith.constant dense<0.000000e+00> : vector<32x32xf32>
    %35 = tpu.matmul %12, %34, %cst_10 {dimension_numbers = #tpu.dot_dimension_numbers<[1], [0], [0], [1], [0, 0, 1, 1], [], []>} : vector<32x16xf32>, vector<16x32xf32>, vector<32x32xf32> -> vector<32x32xf32>
    %36 = arith.index_cast %32 : i32 to index
    %c0_11 = arith.constant 0 : index
    %37 = vector.load %arg2[%36, %c0_11] : memref<64x32xf32, #tpu.memory_space<vmem>>, vector<32x32xf32>
    tpu.vector_store %arg2[%36, %c0_11], %35 {strides = array<i32>} : memref<64x32xf32, #tpu.memory_space<vmem>>, vector<32x32xf32>,
    %c1_i32 = arith.constant 1 : i32
    %c16_i32_12 = arith.constant 16 : i32
    %38 = arith.muli %c1_i32, %c16_i32_12 : i32
    %39 = tpu.assume_multiple %38, 16 : i32
    %c32_i32_13 = arith.constant 32 : i32
    %40 = arith.muli %c1_i32, %c32_i32_13 : i32
    %41 = tpu.assume_multiple %40, 32 : i32
    %42 = arith.index_cast %39 : i32 to index
    %c0_14 = arith.constant 0 : index
    %43 = vector.load %arg3[%42, %c0_14] : memref<32x32xf32, #tpu.memory_space<vmem>>, vector<16x32xf32>
    %cst_15 = arith.constant dense<0.000000e+00> : vector<32x32xf32>
    %44 = tpu.matmul %12, %43, %cst_15 {dimension_numbers = #tpu.dot_dimension_numbers<[1], [0], [0], [1], [0, 0, 1, 1], [], []>} : vector<32x16xf32>, vector<16x32xf32>, vector<32x32xf32> -> vector<32x32xf32>
    %45 = arith.index_cast %41 : i32 to index
    %c0_16 = arith.constant 0 : index
    %46 = vector.load %arg2[%45, %c0_16] : memref<64x32xf32, #tpu.memory_space<vmem>>, vector<32x32xf32>
    tpu.vector_store %arg2[%45, %c0_16], %44 {strides = array<i32>} : memref<64x32xf32, #tpu.memory_space<vmem>>, vector<32x32xf32>,
    %c2_i32 = arith.constant 2 : i32
    return
  }
  func.func @transform_0(%arg0: i32) -> (i32, i32) {
    %c0_i32 = arith.constant 0 : i32
    %c0_i32_0 = arith.constant 0 : i32
    return %arg0, %c0_i32 : i32, i32
  }
  func.func @transform_1(%arg0: i32) -> (i32, i32) {
    %c0_i32 = arith.constant 0 : i32
    %c0_i32_0 = arith.constant 0 : i32
    return %arg0, %c0_i32 : i32, i32
  }
}

</mosaic_0001>

<bundles_post_ra>
// kernel: tpu_custom_call.1
= control target key start
LH: loop header
LB: loop body
LE: loop exit
PB: predicated region body
PF: predicated region fallthrough
CT: control target
= control target key end

     0   :  { %s430_s6 = smov 0   ;;  %s494_s0 = inlined_call_operand.vmem [shape: f32[128,16], index: 0, kind: input, shape index: {}]   ;;  %s495_s1 = inlined_call_operand.vmem [shape: f32[256,32], index: 1, kind: output, shape index: {}]  }
   0x1 LB: > { %s359_s7 = sadd.s32 4294967295, %s416_s6   ;;  %p363_p0 = scmp.ge.s32.totalorder %s416_s6, 1  ;;  %s416_s6 = sphi %s430_s6, %s11_s6  }
   0x2   : > { %p88_p1 = scmp.lt.s32.totalorder %s416_s6, 5 }
   0x4   : > { %p89_p2 = pnand %p363_p0, %p88_p1 }
   0x5   : > { %s364_s8 = sshll.u32 (!%p89_p2), %s359_s7, 2  ;;  %s366_s13 = sshll.u32 (!%p89_p2), %s359_s7, 3 }
   0x6   : > { %92 = sbr.rel (%p89_p2) target bundleno = 334 (0x14e), region = 24  ;;  %p109_p3 = scmp.lt.s32.totalorder (!%p89_p2), %s364_s8, 15 }
   0x7   : > { %p115_p4 = scmp.lt.s32.totalorder (!%p89_p2), %s366_s13, 31 }
   0xb   : > { %v120_v0 = vlaneseq  ;;  %s501_s8 = smov (!%p109_p3, %s364_s8), 15  ;;  %v418_v9 = vmov 1.0   ;;  %vm172_vm6 = vcmask 130048   ;;  %vm214_vm7 = vcmask 261120   ;;  %s503_s13 = smov (!%p115_p4, %s366_s13), 31 }
   0xc   : > { %s365_s9 = sshll.u32 %s501_s8, 3  ;;  %v419_v27 = vmov 0.0   ;;  %s367_s14 = sshll.u32 %s503_s13, 3 }
   0xd   : > { %v440_v1 = vshrl.u32 %v120_v0, 7  ;;  %v130_v2 = vand.u32 127, %v120_v0  ;;  %s112_s12 = scalar_lea.vmem %s494_s0, %s365_s9  ;;  %s118_s17 = scalar_lea.vmem %s495_s1, %s367_s14 }
   0xe   : > { %v169_v10 = vld [vmem:[%s112_s12 + $0x8] sm:$0xff]  ;;  %v168_v11 = vld [vmem:[%s112_s12] sm:$0xff]  ;;  %v170_v12 = vld [vmem:[%s112_s12 + $0x10] sm:$0xff] }
   0xf   : > { %v122_v3 = vadd.s32 8, %v440_v1  ;;  %v155_v4 = vmul.u32 16, %v130_v2  ;;  %v153_v5 = vmul.u32 32, %v440_v1  ;;  %v171_v13 = vld [vmem:[%s112_s12 + $0x18] sm:$0xff]  ;;  %v131_v15 = vmul.u32 32, %v130_v2 }
  0x10   : > { %v125_v19 = vmul.u32 16, %v440_v1  ;;  %v123_v22 = vadd.s32 16, %v440_v1  ;;  %v124_v30 = vadd.s32 24, %v440_v1 }
  0x11   : > { %v154_v6 = vmul.u32 32, %v122_v3  ;;  %v158_v7 = vadd.s32 32, %v153_v5  ;;  %vm156_vm0 = vcmp.le.s32.totalorder %v153_v5, %v155_v4  ;;  %v126_v17 = vmul.u32 16, %v122_v3 }
  0x12   : > { %v136_v18 = vadd.s32 32, %v131_v15  ;;  %vm132_vm10 = vcmp.le.s32.totalorder %v131_v15, %v125_v19  ;;  %v127_v26 = vmul.u32 16, %v123_v22  ;;  %v128_v32 = vmul.u32 16, %v124_v30 }
  0x13   : > { %vm157_vm1 = vcmp.le.s32.totalorder %v154_v6, %v155_v4  ;;  %v159_v8 = vadd.s32 32, %v154_v6  ;;  %vm160_vm2 = vcmp.lt.s32.totalorder %v155_v4, %v158_v7  ;;  %vm454_vm8 = vcmp.le.s32.totalorder %v131_v15, %v126_v17 }
  0x14   : > { %vm162_vm4 = vmand %vm156_vm0, %vm160_vm2  ;;  %vm458_vm9 = vcmp.lt.s32.totalorder %v126_v17, %v136_v18  ;;  %vm137_vm11 = vcmp.lt.s32.totalorder %v125_v19, %v136_v18  ;;  %vm134_vm14 = vcmp.le.s32.totalorder %v131_v15, %v127_v26  ;;  %vm139_vm15 = vcmp.lt.s32.totalorder %v127_v26, %v136_v18 }
  0x15   : > { %vm161_vm3 = vcmp.lt.s32.totalorder %v155_v4, %v159_v8  ;;  %vm141_vm12 = vmand %vm132_vm10, %vm137_vm11  ;;  %vm140_vm2 = vcmp.lt.s32.totalorder %v128_v32, %v136_v18 }
  0x16   : > { %vm163_vm5 = vmand %vm157_vm1, %vm161_vm3  ;;  %v368_v28 = vsel %vm141_vm12, 1.0, %v419_v27  ;;  %vm135_vm1 = vcmp.le.s32.totalorder %v131_v15, %v128_v32 }
  0x17   : > { %394 = vmatpush.msk.msra.mxu3 %vm163_vm5, %v418_v9  ;;  %374 = vmatpush.msk.msra.mxu0 %vm163_vm5, %v418_v9  ;;  %vm142_vm13 = vmand %vm454_vm8, %vm458_vm9 }
  0x18   : > { %v369_v29 = vsel %vm142_vm13, 1.0, %v419_v27  ;;  %vm143_vm0 = vmand %vm134_vm14, %vm139_vm15 }
  0x19   : > { %395 = vmatpush.msk.msra.mxu3 %vm162_vm4, %v418_v9  ;;  %375 = vmatpush.msk.msra.mxu0 %vm162_vm4, %v418_v9  ;;  %v370_v33 = vsel %vm143_vm0, 1.0, %v419_v27  ;;  %vm144_vm3 = vmand %vm135_vm1, %vm140_vm2 }
  0x1a   : > { %377 = vmatmul.msk.f32.vlgmr.msra.gmra.mxu3 %vm172_vm6, %v169_v10  ;;  %376 = vmatmul.msk.f32.vlgmr.msra.gmra.mxu0 %vm172_vm6, %v168_v11  ;;  %v371_v36 = vsel %vm144_vm3, 1.0, %v419_v27 }
  0x22   : > { %378 = vmatmul.msk.f32.gmra.mxu3 %vm172_vm6, %v170_v12 }
  0x2a   : > { %379 = vmatmul.msk.f32.gmra.mxu3 %vm172_vm6, %v171_v13 }
  0x97   : > { %v202_v14 = vpop.f32.mrf.mxu0 }
  0x98   : > { %215 = vst.msk [vmem:[#allocation2] sm:$0xff] %vm214_vm7, %v202_v14 }
  0x9d   : > { %v205_v16 = vpop.f32.mrf.mxu3 }
  0x9e   : > { %216 = vst.msk [vmem:[#allocation2 + $0x8] sm:$0xff] %vm214_vm7, %v205_v16 }
  0x9f   : > { %v219_v25 = vld [vmem:[#allocation2] sm:$0xff] }
  0xa5   : > { %v208_v23 = vpop.f32.mrf.mxu3  ;;  %v220_v24 = vld [vmem:[#allocation2 + $0x8] sm:$0xff] }
  0xa6   : > { %217 = vst.msk [vmem:[#allocation2 + $0x10] sm:$0xff] %vm214_vm7, %v208_v23  ;;  %247 = vmatpush.msrb.mxu0 %v220_v24  ;;  %396 = vmatpush.msra.mxu1 %v220_v24 }
  0xa8   : > { %248 = vmatpush.msrb.mxu0 %v219_v25  ;;  %397 = vmatpush.msra.mxu1 %v219_v25 }
  0xa9   : > { %381 = vmatmul.msk.f32.vlgmr.msra.gmra.mxu1 %vm172_vm6, %v369_v29  ;;  %380 = vmatmul.msk.f32.vlgmr.msrb.gmra.mxu0 %vm172_vm6, %v368_v28 }
  0xad   : > { %v211_v31 = vpop.f32.mrf.mxu3  ;;  %v267_v35 = vld [vmem:[#allocation2 + $0x10] sm:$0xff] }
  0xae   : > { %218 = vst.msk [vmem:[#allocation2 + $0x18] sm:$0xff] %vm214_vm7, %v211_v31 }
  0xb1   : > { %382 = vmatmul.msk.f32.gmra.mxu1 %vm172_vm6, %v370_v33 }
  0xb5   : > { %v268_v34 = vld [vmem:[#allocation2 + $0x18] sm:$0xff] }
  0xb6   : > { %283 = vmatpush.msra.mxu0 %v268_v34  ;;  %398 = vmatpush.msra.mxu2 %v268_v34 }
  0xb8   : > { %284 = vmatpush.msra.mxu0 %v267_v35  ;;  %399 = vmatpush.msra.mxu2 %v267_v35 }
  0xb9   : > { %385 = vmatmul.msk.f32.vlgmr.msra.gmra.mxu2 %vm172_vm6, %v369_v29  ;;  %383 = vmatmul.msk.f32.gmra.mxu1 %vm172_vm6, %v371_v36 }
  0xba   : > { %384 = vmatmul.msk.f32.vlgmr.msra.gmra.mxu0 %vm172_vm6, %v368_v28 }
  0xc1   : > { %386 = vmatmul.msk.f32.gmra.mxu2 %vm172_vm6, %v370_v33 }
  0xc9   : > { %387 = vmatmul.msk.f32.gmra.mxu2 %vm172_vm6, %v371_v36 }
 0x126   : > { %v253_v37 = vpop.f32.mrf.mxu1  ;;  %v250_v38 = vpop.f32.mrf.mxu0 }
 0x127   : > { %263 = vst.msk [vmem:[%s118_s17 + $0x8] sm:$0xff] %vm214_vm7, %v253_v37 }
 0x128   : > { %262 = vst.msk [vmem:[%s118_s17] sm:$0xff] %vm214_vm7, %v250_v38 }
 0x12e   : > { %v256_v39 = vpop.f32.mrf.mxu1 }
 0x12f   : > { %264 = vst.msk [vmem:[%s118_s17 + $0x10] sm:$0xff] %vm214_vm7, %v256_v39 }
 0x136   : > { %v259_v40 = vpop.f32.mrf.mxu1 }
 0x137   : > { %265 = vst.msk [vmem:[%s118_s17 + $0x18] sm:$0xff] %vm214_vm7, %v259_v40  ;;  %v286_v41 = vpop.f32.mrf.mxu0 }
 0x138   : > { %388 = vst.msk [vmem:[%s118_s17 + $0x20] sm:$0xff] %vm214_vm7, %v286_v41 }
 0x13c   : > { %v289_v42 = vpop.f32.mrf.mxu2 }
 0x13d   : > { %389 = vst.msk [vmem:[%s118_s17 + $0x28] sm:$0xff] %vm214_vm7, %v289_v42 }
 0x144   : > { %v292_v43 = vpop.f32.mrf.mxu2 }
 0x145   : > { %390 = vst.msk [vmem:[%s118_s17 + $0x30] sm:$0xff] %vm214_vm7, %v292_v43 }
 0x14c   : > { %v295_v44 = vpop.f32.mrf.mxu2 }
 0x14d   : > { %391 = vst.msk [vmem:[%s118_s17 + $0x38] sm:$0xff] %vm214_vm7, %v295_v44 }
 0x14e PF: > { %s11_s6 = sadd.s32 1, %s416_s6  }
 0x14f   : > { %p8_p5 = scmp.ge.s32.totalorder %s11_s6, 6  }
 0x151   :  { %10 = sbr.rel (!%p8_p5) target bundleno = 1 (0x1), region = 56 }

</bundles_post_ra>
